<compile_context>
chip_gen: v7x
topology: tpu7x:2x2x1
jax: 0.10.0
libtpu: 0.0.40
codegen_flags: <defaults>
</compile_context>

<pallas_src>
import functools

import jax
import jax.numpy as jnp
from jax.experimental import pallas as pl
from jax.experimental.pallas import tpu as pltpu


def _round_up(x: int, m: int) -> int:
    return (x + m - 1) // m * m


def _skipgram_logz_kernel(center_ref, emb_u_ref, logz_ref, m_ref, l_ref,
                          *, v_total: int, tile_v: int, mask_last: bool):
    """Grid = (B blocks, V tiles). Streams Emb_u over V with an online logsumexp."""
    k = pl.program_id(1)
    nv = pl.num_programs(1)

    @pl.when(k == 0)
    def _init():
        m_ref[...] = jnp.full(m_ref.shape, -jnp.inf, dtype=jnp.float32)
        l_ref[...] = jnp.zeros(l_ref.shape, dtype=jnp.float32)

    # logits[b, v] = <center[b], emb_u[v]> -- one MXU matmul, contraction over E
    # (lane axis), f32 accumulation regardless of the streamed dtype.
    logits = jax.lax.dot_general(
        center_ref[...], emb_u_ref[...],
        dimension_numbers=(((1,), (1,)), ((), ())),
        preferred_element_type=jnp.float32,
    )                                                  # (B_BLK, TILE_V) f32

    def _accumulate(lg):
        m_prev = m_ref[...]                            # (B_BLK, 1)
        m_new = jnp.maximum(m_prev, jnp.max(lg, axis=-1, keepdims=True))
        l_ref[...] = (l_ref[...] * jnp.exp(m_prev - m_new)
                      + jnp.sum(jnp.exp(lg - m_new), axis=-1, keepdims=True))
        m_ref[...] = m_new

    if mask_last:
        # Vocab padding lives only in the final V tile (v_pad = round_up(V, tile_v)),
        # so the iota/compare/select mask runs only there; steady-state tiles skip it.
        @pl.when(k < nv - 1)
        def _steady():
            _accumulate(logits)

        @pl.when(k == nv - 1)
        def _tail():
            v_idx = k * tile_v + jax.lax.broadcasted_iota(jnp.int32, logits.shape, 1)
            _accumulate(jnp.where(v_idx < v_total, logits, -jnp.inf))
    else:
        _accumulate(logits)

    @pl.when(k == nv - 1)
    def _finalize():
        # Invariant: every V tile (incl. the last) contains >= 1 real vocab row, so m
        # is finite and l > 0 here -- no NaN/-inf path.  Do not change the v_pad
        # derivation (round_up(V, tv)) without re-checking this.
        logz_ref[...] = m_ref[...] + jnp.log(l_ref[...])


def skipgram_forward(emb_v, emb_u, center_words, target_words, all_vocabs=None,
                     *, tile_v=2048, compute_dtype=jnp.bfloat16):
    """NLL matching PyTorch Skipgram.forward.

    NOTE: like the original training loop, this assumes `all_vocabs` enumerates the
    full vocabulary identically for every batch row, so norm_scores == center @ Emb_u^T
    and the (B, V, E) gather never needs to be materialized. `all_vocabs` is accepted
    only for signature compatibility.

    The streamed table/center are cast to `compute_dtype` (default bf16 -- halves the
    HBM-bound Emb_u traffic; accumulation stays f32).  The numerator scores term is
    computed in f32 in the wrapper, so only the logZ term sees reduced precision.
    """
    del all_vocabs
    V, E = emb_u.shape
    B = center_words.shape[0]

    # Row gathers (only B rows each) + the scores dot stay as plain-JAX f32 glue.
    center_f32 = jnp.take(emb_v, center_words[:, 0], axis=0).astype(jnp.float32)  # (B, E)
    target_f32 = jnp.take(emb_u, target_words[:, 0], axis=0).astype(jnp.float32)  # (B, E)
    scores = jnp.sum(center_f32 * target_f32, axis=-1)                             # (B,)

    itemsize = jnp.dtype(compute_dtype).itemsize

    # Batch block: as wide as the MXU allows (<=256 rows), multiple of 16 so bf16
    # sublane packing is full; for B > 256 this also gives >=2 parallel b-blocks
    # (both v7x TensorCores get work).
    row_mult = 16 if itemsize < 4 else 8
    B_BLK = min(256, _round_up(max(B, 1), row_mult))
    b_pad = _round_up(max(B, 1), B_BLK)
    e_pad = _round_up(E, 128)

    # Generation-aware VMEM budgeting (v7x has 64 MiB/TC vs 128 MiB on v5e/v6e).
    try:
        vmem_cap = int(pltpu.get_tpu_info().vmem_capacity_bytes)
    except Exception:
        vmem_cap = 64 << 20

    # V tile size: amortize grid-step overhead with a big double-buffered Emb_u stream,
    # but cap the (B_BLK, tv) f32 logits intermediate around 1 MiB to keep vreg/VMEM
    # pressure (spill stores) off the critical path.
    stream_budget = min(16 << 20, vmem_cap // 4)
    tv_stream = max(128, (stream_budget // (2 * e_pad * itemsize)) // 128 * 128)
    tv_logits = max(128, ((1 << 20) // (B_BLK * 4)) // 128 * 128)
    tv = min(_round_up(tile_v, 128), tv_stream, tv_logits, _round_up(V, 128))
    v_pad = _round_up(V, tv)
    mask_last = (v_pad != V)

    center_p = jnp.zeros((b_pad, e_pad), compute_dtype).at[:B, :E].set(
        center_f32.astype(compute_dtype))
    table_p = jnp.zeros((v_pad, e_pad), compute_dtype).at[:V, :E].set(
        emb_u.astype(compute_dtype))

    nb = b_pad // B_BLK
    nv = v_pad // tv

    # Scoped-VMEM limit sized from actual need (double-buffered streams + logits
    # intermediates) with headroom, kept well under physical VMEM on every generation.
    need = (2 * tv * e_pad * itemsize            # Emb_u double buffer
            + 2 * B_BLK * e_pad * itemsize       # center double buffer
            + 4 * B_BLK * 128 * 4                # out double buffer + m/l scratch (lane-padded)
            + 4 * B_BLK * tv * 4)                # logits/exp intermediates headroom
    vmem_limit = int(min(max(2 * need, 32 << 20), (3 * vmem_cap) // 4))

    kernel = functools.partial(_skipgram_logz_kernel,
                               v_total=V, tile_v=tv, mask_last=mask_last)

    logz = pl.pallas_call(
        kernel,
        out_shape=jax.ShapeDtypeStruct((b_pad, 1), jnp.float32),
        grid_spec=pltpu.PrefetchScalarGridSpec(
            num_scalar_prefetch=0,
            grid=(nb, nv),
            in_specs=[
                pl.BlockSpec((B_BLK, e_pad), lambda b, k: (b, 0)),   # center rows
                pl.BlockSpec((tv, e_pad), lambda b, k: (k, 0)),      # Emb_u V-tile
            ],
            out_specs=pl.BlockSpec((B_BLK, 1), lambda b, k: (b, 0)),
            scratch_shapes=[
                pltpu.VMEM((B_BLK, 1), jnp.float32),   # running max  m
                pltpu.VMEM((B_BLK, 1), jnp.float32),   # running sum  l
            ],
        ),
        compiler_params=pltpu.CompilerParams(
            # B blocks are independent (megacore-parallel on v7x); V is a reduction axis.
            dimension_semantics=("parallel", "arbitrary"),
            vmem_limit_bytes=vmem_limit,
        ),
    )(center_p, table_p)

    # -mean over the real batch rows of log p(target | center) = scores - logZ.
    return -jnp.mean(scores - logz[:B, 0])


if __name__ == "__main__":
    # Small shapes consistent with the module's forward.
    B = 2          # batch
    V = 16         # vocab size (all_vocabs enumerates the whole vocabulary)
    E = 32         # embedding size

    key = jax.random.PRNGKey(0)
    k_v, k_u, k_c, k_t = jax.random.split(key, 4)

    # Modest init scale keeps logits O(1) so bf16 streaming / default-precision MXU
    # paths cannot drift outside the comparison tolerance.
    emb_v = 0.25 * jax.random.normal(k_v, (V, E), dtype=jnp.float32)
    emb_u = 0.25 * jax.random.normal(k_u, (V, E), dtype=jnp.float32)

    center_words = jax.random.randint(k_c, (B, 1), 0, V, dtype=jnp.int32)
    target_words = jax.random.randint(k_t, (B, 1), 0, V, dtype=jnp.int32)
    all_vocabs = jnp.broadcast_to(jnp.arange(V, dtype=jnp.int32), (B, V))

    nll = skipgram_forward(emb_v, emb_u, center_words, target_words, all_vocabs)
    nll = jax.block_until_ready(nll)

    # Plain-JAX f32 reference of the exact torch expression (unstabilized form).
    ce = jnp.take(emb_v, center_words[:, 0], axis=0)
    te = jnp.take(emb_u, target_words[:, 0], axis=0)
    ae = jnp.take(emb_u, all_vocabs, axis=0)
    scores_ref = jnp.sum(te * ce, axis=-1, keepdims=True)
    norm_ref = jnp.einsum("bve,be->bv", ae, ce, precision=jax.lax.Precision.HIGHEST)
    ref = -jnp.mean(
        jnp.log(jnp.exp(scores_ref)
                / jnp.sum(jnp.exp(norm_ref), axis=1, keepdims=True)))

    assert jnp.isfinite(nll), "NLL is not finite"
    # Tolerance covers the intentional bf16 cast of the streamed table/center (logZ
    # term) vs the f32 reference; the math is otherwise identical.
    assert jnp.allclose(nll, ref, rtol=2e-2, atol=2e-2), (nll, ref)

    print("KERNEL_OK")
</pallas_src>

<mosaic_0001>
module attributes {stable_mosaic.version = 11 : i64} {
  func.func @_skipgram_logz_kernel(%arg0: i32, %arg1: i32, %arg2: memref<16x128xbf16, #tpu.memory_space<vmem>>, %arg3: memref<128x128xbf16, #tpu.memory_space<vmem>>, %arg4: memref<16x1xf32, #tpu.memory_space<vmem>>, %arg5: memref<16x1xf32, #tpu.memory_space<vmem>>, %arg6: memref<16x1xf32, #tpu.memory_space<vmem>>) attributes {dimension_semantics = [#tpu.dimension_semantics<parallel>, #tpu.dimension_semantics<arbitrary>], iteration_bounds = array<i64: 1, 1>, scalar_prefetch = 0 : i64, scratch_operands = 2 : i64, tpu.core_type = #tpu.core_type<tc>, window_params = [{transform_indices = @transform_0, window_bounds = array<i64: 16, 128>}, {transform_indices = @transform_1, window_bounds = array<i64: 128, 128>}, {transform_indices = @transform_2, window_bounds = array<i64: 16, 1>}]} {
    %c0_i32 = arith.constant 0 : i32
    %0 = arith.cmpi eq, %arg1, %c0_i32 : i32
    %1 = arith.extui %0 : i1 to i32
    %c0_i32_0 = arith.constant 0 : i32
    %2 = arith.cmpi ne, %1, %c0_i32_0 : i32
    scf.if %2 {
      %cst_10 = arith.constant 0xFF800000 : f32
      %15 = vector.broadcast %cst_10 : f32 to vector<16x1xf32>
      %c0_11 = arith.constant 0 : index
      %c0_12 = arith.constant 0 : index
      %16 = vector.load %arg5[%c0_11, %c0_12] : memref<16x1xf32, #tpu.memory_space<vmem>>, vector<16x1xf32>
      tpu.vector_store %arg5[%c0_11, %c0_12], %15 {strides = array<i32>} : memref<16x1xf32, #tpu.memory_space<vmem>>, vector<16x1xf32>,
      %cst_13 = arith.constant 0.000000e+00 : f32
      %17 = vector.broadcast %cst_13 : f32 to vector<16x1xf32>
      %c0_14 = arith.constant 0 : index
      %c0_15 = arith.constant 0 : index
      %18 = vector.load %arg6[%c0_14, %c0_15] : memref<16x1xf32, #tpu.memory_space<vmem>>, vector<16x1xf32>
      tpu.vector_store %arg6[%c0_14, %c0_15], %17 {strides = array<i32>} : memref<16x1xf32, #tpu.memory_space<vmem>>, vector<16x1xf32>,
    } else {
    }
    %c0 = arith.constant 0 : index
    %c0_1 = arith.constant 0 : index
    %3 = vector.load %arg2[%c0, %c0_1] : memref<16x128xbf16, #tpu.memory_space<vmem>>, vector<16x128xbf16>
    %c0_2 = arith.constant 0 : index
    %c0_3 = arith.constant 0 : index
    %4 = vector.load %arg3[%c0_2, %c0_3] : memref<128x128xbf16, #tpu.memory_space<vmem>>, vector<128x128xbf16>
    %cst = arith.constant dense<0.000000e+00> : vector<16x128xf32>
    %5 = tpu.matmul %3, %4, %cst {dimension_numbers = #tpu.dot_dimension_numbers<[1], [1], [0], [0], [0, 0, 1, 0], [], []>} : vector<16x128xbf16>, vector<128x128xbf16>, vector<16x128xf32> -> vector<16x128xf32>
    %c0_i32_4 = arith.constant 0 : i32
    %6 = arith.cmpi slt, %arg1, %c0_i32_4 : i32
    %7 = arith.extui %6 : i1 to i32
    %c0_i32_5 = arith.constant 0 : i32
    %8 = arith.cmpi ne, %7, %c0_i32_5 : i32
    scf.if %8 {
      %c0_10 = arith.constant 0 : index
      %c0_11 = arith.constant 0 : index
      %15 = vector.load %arg5[%c0_10, %c0_11] : memref<16x1xf32, #tpu.memory_space<vmem>>, vector<16x1xf32>
      %cst_12 = arith.constant dense<0xFF800000> : vector<16xf32>
      %16 = vector.multi_reduction <maximumf>, %5, %cst_12 [1] : vector<16x128xf32> to vector<16xf32>
      %17 = vector.shape_cast %16 : vector<16xf32> to vector<16x1xf32>
      %18 = arith.maximumf %15, %17 : vector<16x1xf32>
      %c0_13 = arith.constant 0 : index
      %c0_14 = arith.constant 0 : index
      %19 = vector.load %arg6[%c0_13, %c0_14] : memref<16x1xf32, #tpu.memory_space<vmem>>, vector<16x1xf32>
      %20 = arith.subf %15, %18 : vector<16x1xf32>
      %21 = math.exp %20 : vector<16x1xf32>
      %22 = arith.mulf %19, %21 : vector<16x1xf32>
      %23 = vector.broadcast %18 : vector<16x1xf32> to vector<16x128xf32>
      %24 = arith.subf %5, %23 : vector<16x128xf32>
      %25 = math.exp %24 : vector<16x128xf32>
      %cst_15 = arith.constant dense<0.000000e+00> : vector<16xf32>
      %26 = vector.multi_reduction <add>, %25, %cst_15 [1] : vector<16x128xf32> to vector<16xf32>
      %27 = vector.shape_cast %26 : vector<16xf32> to vector<16x1xf32>
      %28 = arith.addf %22, %27 : vector<16x1xf32>
      %c0_16 = arith.constant 0 : index
      %c0_17 = arith.constant 0 : index
      %29 = vector.load %arg6[%c0_16, %c0_17] : memref<16x1xf32, #tpu.memory_space<vmem>>, vector<16x1xf32>
      tpu.vector_store %arg6[%c0_16, %c0_17], %28 {strides = array<i32>} : memref<16x1xf32, #tpu.memory_space<vmem>>, vector<16x1xf32>,
      %c0_18 = arith.constant 0 : index
      %c0_19 = arith.constant 0 : index
      %30 = vector.load %arg5[%c0_18, %c0_19] : memref<16x1xf32, #tpu.memory_space<vmem>>, vector<16x1xf32>
      tpu.vector_store %arg5[%c0_18, %c0_19], %18 {strides = array<i32>} : memref<16x1xf32, #tpu.memory_space<vmem>>, vector<16x1xf32>,
    } else {
    }
    %c0_i32_6 = arith.constant 0 : i32
    %9 = arith.cmpi eq, %arg1, %c0_i32_6 : i32
    %10 = arith.extui %9 : i1 to i32
    %c0_i32_7 = arith.constant 0 : i32
    %11 = arith.cmpi ne, %10, %c0_i32_7 : i32
    scf.if %11 {
      %c128_i32 = arith.constant 128 : i32
      %15 = arith.muli %arg1, %c128_i32 : i32
      %16 = tpu.iota {dimensions = array<i32: 1>} : vector<16x128xi32>
      %17 = vector.broadcast %15 : i32 to vector<16x128xi32>
      %18 = arith.addi %17, %16 : vector<16x128xi32>
      %c16_i32 = arith.constant 16 : i32
      %19 = vector.broadcast %c16_i32 : i32 to vector<16x128xi32>
      %20 = arith.cmpi slt, %18, %19 : vector<16x128xi32>
      %cst_10 = arith.constant 0xFF800000 : f32
      %21 = vector.broadcast %cst_10 : f32 to vector<16x128xf32>
      %22 = arith.select %20, %5, %21 : vector<16x128xi1>, vector<16x128xf32>
      %c0_11 = arith.constant 0 : index
      %c0_12 = arith.constant 0 : index
      %23 = vector.load %arg5[%c0_11, %c0_12] : memref<16x1xf32, #tpu.memory_space<vmem>>, vector<16x1xf32>
      %cst_13 = arith.constant dense<0xFF800000> : vector<16xf32>
      %24 = vector.multi_reduction <maximumf>, %22, %cst_13 [1] : vector<16x128xf32> to vector<16xf32>
      %25 = vector.shape_cast %24 : vector<16xf32> to vector<16x1xf32>
      %26 = arith.maximumf %23, %25 : vector<16x1xf32>
      %c0_14 = arith.constant 0 : index
      %c0_15 = arith.constant 0 : index
      %27 = vector.load %arg6[%c0_14, %c0_15] : memref<16x1xf32, #tpu.memory_space<vmem>>, vector<16x1xf32>
      %28 = arith.subf %23, %26 : vector<16x1xf32>
      %29 = math.exp %28 : vector<16x1xf32>
      %30 = arith.mulf %27, %29 : vector<16x1xf32>
      %31 = vector.broadcast %26 : vector<16x1xf32> to vector<16x128xf32>
      %32 = arith.subf %22, %31 : vector<16x128xf32>
      %33 = math.exp %32 : vector<16x128xf32>
      %cst_16 = arith.constant dense<0.000000e+00> : vector<16xf32>
      %34 = vector.multi_reduction <add>, %33, %cst_16 [1] : vector<16x128xf32> to vector<16xf32>
      %35 = vector.shape_cast %34 : vector<16xf32> to vector<16x1xf32>
      %36 = arith.addf %30, %35 : vector<16x1xf32>
      %c0_17 = arith.constant 0 : index
      %c0_18 = arith.constant 0 : index
      %37 = vector.load %arg6[%c0_17, %c0_18] : memref<16x1xf32, #tpu.memory_space<vmem>>, vector<16x1xf32>
      tpu.vector_store %arg6[%c0_17, %c0_18], %36 {strides = array<i32>} : memref<16x1xf32, #tpu.memory_space<vmem>>, vector<16x1xf32>,
      %c0_19 = arith.constant 0 : index
      %c0_20 = arith.constant 0 : index
      %38 = vector.load %arg5[%c0_19, %c0_20] : memref<16x1xf32, #tpu.memory_space<vmem>>, vector<16x1xf32>
      tpu.vector_store %arg5[%c0_19, %c0_20], %26 {strides = array<i32>} : memref<16x1xf32, #tpu.memory_space<vmem>>, vector<16x1xf32>,
    } else {
    }
    %c0_i32_8 = arith.constant 0 : i32
    %12 = arith.cmpi eq, %arg1, %c0_i32_8 : i32
    %13 = arith.extui %12 : i1 to i32
    %c0_i32_9 = arith.constant 0 : i32
    %14 = arith.cmpi ne, %13, %c0_i32_9 : i32
    scf.if %14 {
      %c0_10 = arith.constant 0 : index
      %c0_11 = arith.constant 0 : index
      %15 = vector.load %arg5[%c0_10, %c0_11] : memref<16x1xf32, #tpu.memory_space<vmem>>, vector<16x1xf32>
      %c0_12 = arith.constant 0 : index
      %c0_13 = arith.constant 0 : index
      %16 = vector.load %arg6[%c0_12, %c0_13] : memref<16x1xf32, #tpu.memory_space<vmem>>, vector<16x1xf32>
      %17 = math.log %16 : vector<16x1xf32>
      %18 = arith.addf %15, %17 : vector<16x1xf32>
      %c0_14 = arith.constant 0 : index
      %c0_15 = arith.constant 0 : index
      %19 = vector.load %arg4[%c0_14, %c0_15] : memref<16x1xf32, #tpu.memory_space<vmem>>, vector<16x1xf32>
      tpu.vector_store %arg4[%c0_14, %c0_15], %18 {strides = array<i32>} : memref<16x1xf32, #tpu.memory_space<vmem>>, vector<16x1xf32>,
    } else {
    }
    return
  }
  func.func @transform_0(%arg0: i32, %arg1: i32) -> (i32, i32) {
    %c0_i32 = arith.constant 0 : i32
    %c0_i32_0 = arith.constant 0 : i32
    return %arg0, %c0_i32 : i32, i32
  }
  func.func @transform_1(%arg0: i32, %arg1: i32) -> (i32, i32) {
    %c0_i32 = arith.constant 0 : i32
    %c0_i32_0 = arith.constant 0 : i32
    return %arg1, %c0_i32 : i32, i32
  }
  func.func @transform_2(%arg0: i32, %arg1: i32) -> (i32, i32) {
    %c0_i32 = arith.constant 0 : i32
    %c0_i32_0 = arith.constant 0 : i32
    return %arg0, %c0_i32 : i32, i32
  }
}

</mosaic_0001>

<bundles_post_ra>
// kernel: tpu_custom_call.1
= control target key start
LH: loop header
LB: loop body
LE: loop exit
PB: predicated region body
PF: predicated region fallthrough
CT: control target
= control target key end

     0   :  { %7 = vsyncpa [#allocation5], 0  ;;  %s465_s0 = inlined_call_operand.hbm [shape: bf16[16,128], index: 0, kind: input, shape index: {}]   ;;  %s466_s1 = inlined_call_operand.hbm [shape: bf16[128,128], index: 1, kind: input, shape index: {}]   ;;  %s467_s2 = inlined_call_operand.vmem [shape: f32[16,1], index: 2, kind: output, shape index: {}]  }
   0x1   :  { %8 = vsyncpa [#allocation7], 0  ;;  %s402_s9 = smov [#allocation4]   ;;  %s354_s13 = scalar_lea.hbm %s465_s0, 128 }
   0x2   :  { %s14_s10 = sshll.u32 %s402_s9, 4  ;;  %p355_p0 = scmp.ne.s32.totalorder %s465_s0, %s354_s13  ;;  %s15_s10 = int_to_ptr.vmem [resolvable:$true] %s14_s10 }
   0x3   :  { %p358_p1 = scmp.lt.u32.totalorder %s354_s13, %s465_s0 }
   0x5   :  { %p360_p2 = pnand %p358_p1, %p355_p0 }
   0x7   :  { %363 = shalt.err (!%p360_p2)
}
   0x8   :  { %s364_s18 = scalar_lea.vmem %s15_s10, 128  ;;  %p369_p4 = scmp.lt.s32.totalorder %s15_s10, %s15_s10 }
   0x9   :  { %p365_p3 = scmp.ne.s32.totalorder %s15_s10, %s364_s18  ;;  %p370_p5 = scmp.lt.s32.totalorder %s364_s18, %s364_s18 }
   0xb   :  { %p371_p6 = por %p370_p5, %p369_p4 }
   0xd   :  { %p372_p7 = pnand %p371_p6, %p365_p3 }
   0xf   :  { %375 = shalt.err (!%p372_p7)
}
  0x10   :  { %s403_s19 = smov 64   ;;  %s404_s20 = smov 4  }
  0x11   :  { %20 = dma.hbm_to_vmem [thread:$0]  %s465_s0, 128, %s15_s10, [#allocation5], %s403_s19, %s403_s19, %s404_s20  }
  0x12   :  { %s405_s23 = smov [#allocation6]   ;;  %s376_s27 = scalar_lea.hbm %s466_s1, 1024 }
  0x13   :  { %s26_s24 = sshll.u32 %s405_s23, 4  ;;  %p377_p8 = scmp.ne.s32.totalorder %s466_s1, %s376_s27  ;;  %s27_s24 = int_to_ptr.vmem [resolvable:$true] %s26_s24 }
  0x14   :  { %p380_p9 = scmp.lt.u32.totalorder %s376_s27, %s466_s1 }
  0x16   :  { %p382_p10 = pnand %p380_p9, %p377_p8 }
  0x18   :  { %385 = shalt.err (!%p382_p10)
}
  0x19   :  { %s386_s4 = scalar_lea.vmem %s27_s24, 1024  ;;  %p391_p12 = scmp.lt.s32.totalorder %s27_s24, %s27_s24 }
  0x1a   :  { %p387_p11 = scmp.ne.s32.totalorder %s27_s24, %s386_s4  ;;  %p392_p13 = scmp.lt.s32.totalorder %s386_s4, %s386_s4 }
  0x1c   :  { %p393_p0 = por %p392_p13, %p391_p12 }
  0x1e   :  { %p394_p1 = pnand %p393_p0, %p387_p11 }
  0x20   :  { %397 = shalt.err (!%p394_p1)
}
  0x21   :  { %32 = dma.hbm_to_vmem [thread:$0]  %s466_s1, 1024, %s27_s24, [#allocation7], %s403_s19, %s403_s19, %s404_s20  }
  0x22   :  { %398 = dma.done.wait [#allocation5], 128  }
  0x23   :  { %399 = vsyncadd [#allocation5], 4294967168 }
  0x24   :  { %400 = dma.done.wait [#allocation7], 1024  }
  0x25   :  { %401 = vsyncadd [#allocation7], 4294966272  ;;  %v406_v0 = vmov 0.0   ;;  %vm407_vm0 = vmmov 0   ;;  %v333_v1 = vld [vmem:[#allocation6] sm:$0xff]   ;;  %v334_v2 = vld [vmem:[#allocation6 + $0x8] sm:$0xff]   ;;  %v215_v11 = vlaneseq }
  0x26   :  { %303 = vmatprep.subr.bf16.mxu0 %v406_v0  ;;  %319 = vmatprep.mubr.msk.bf16.mxu0 %vm407_vm0, %v406_v0  ;;  %v335_v3 = vld [vmem:[#allocation6 + $0x10] sm:$0xff]   ;;  %v336_v4 = vld [vmem:[#allocation6 + $0x18] sm:$0xff]   ;;  %v337_v5 = vld [vmem:[#allocation6 + $0x20] sm:$0xff]   ;;  %vm44_vm1 = vcmask 7168   ;;  %v408_v10 = vmov -inf   ;;  %v409_v19 = vmov 0  }
  0x27   :  { %304 = vmatpush3.bf16.xpose.msra.mxu0 %v333_v1  ;;  %v338_v6 = vld [vmem:[#allocation6 + $0x28] sm:$0xff]   ;;  %v339_v7 = vld [vmem:[#allocation6 + $0x30] sm:$0xff]   ;;  %v340_v8 = vld [vmem:[#allocation6 + $0x38] sm:$0xff]   ;;  %45 = vst.msk [vmem:[#allocation2] sm:$0xff] %vm44_vm1, %v408_v10  ;;  %v216_v12 = vand.u32 127, %v215_v11  ;;  %331 = vset.pattern.permute.xlu1 %v409_v19 }
  0x28   :  { %305 = vmatprep.subr.bf16.mxu0 %v406_v0  ;;  %v341_v9 = vld [vmem:[#allocation4] sm:$0xff]   ;;  %46 = vst.msk [vmem:[#allocation2 + $0x8] sm:$0xff] %vm44_vm1, %v408_v10  ;;  %47 = vst.msk [vmem:[#allocation3] sm:$0xff] %vm44_vm1, %v406_v0  ;;  %332 = vset.pattern.permute.xlu0 %v409_v19 }
  0x29   :  { %48 = vst.msk [vmem:[#allocation3 + $0x8] sm:$0xff] %vm44_vm1, %v406_v0  ;;  %vm219_vm2 = vcmp.lt.s32.totalorder %v216_v12, 16 }
  0x2e   :  { %v222_v20 = vld [vmem:[#allocation2] sm:$0xff] }
  0x2f   :  { %306 = vmatpush3.bf16.xpose.msra.mxu0 %v334_v2  ;;  %v223_v23 = vld [vmem:[#allocation2 + $0x8] sm:$0xff]  ;;  %v230_v39 = vld [vmem:[#allocation3] sm:$0xff] }
  0x30   :  { %307 = vmatprep.subr.bf16.mxu0 %v406_v0  ;;  %v231_v43 = vld [vmem:[#allocation3 + $0x8] sm:$0xff] }
  0x37   :  { %308 = vmatpush3.bf16.xpose.msra.mxu0 %v335_v3 }
  0x38   :  { %309 = vmatprep.subr.bf16.mxu0 %v406_v0 }
  0x3f   :  { %310 = vmatpush3.bf16.xpose.msra.mxu0 %v336_v4 }
  0x40   :  { %311 = vmatprep.subr.bf16.mxu0 %v406_v0 }
  0x47   :  { %312 = vmatpush3.bf16.xpose.msra.mxu0 %v337_v5 }
  0x48   :  { %313 = vmatprep.subr.bf16.mxu0 %v406_v0 }
  0x4f   :  { %314 = vmatpush3.bf16.xpose.msra.mxu0 %v338_v6 }
  0x50   :  { %315 = vmatprep.subr.bf16.mxu0 %v406_v0 }
  0x57   :  { %316 = vmatpush3.bf16.xpose.msra.mxu0 %v339_v7 }
  0x58   :  { %317 = vmatprep.subr.bf16.mxu0 %v406_v0 }
  0x5f   :  { %318 = vmatpush3.bf16.xpose.msra.mxu0 %v340_v8 }
  0x66   :  { %320 = vmatmul.mubr.bf16.vlgmr.msra.gmra.mrb[0].mxu0 %v341_v9 }
 0x139   :  { %v155_v13 = vpop.f32.mrb[0].mxu0 }
 0x13a   :  { %v321_v14 = vpop.f32.mrb[1].mxu0  ;;  %v220_v15 = vsel %vm219_vm2, %v155_v13, -inf }
 0x13b   :  { %224 = vmax.xlane.f32.xlu0 %v220_v15  ;;  %v158_v16 = vpop.f32.mrb[2].mxu0 }
 0x13c   :  { %v322_v17 = vpop.f32.mrb[3].mxu0  ;;  %v221_v18 = vsel %vm219_vm2, %v158_v16, -inf }
 0x13f   :  { %226 = vmax.xlane.f32.xlu0 %v221_v18 }
 0x1c8   :  { %v225_v21 = vpop.xlane.xlu0 %224 }
 0x1c9   :  { %v228_v22 = vmax.f32 %v222_v20, %v225_v21 }
 0x1cb   :  { %v232_v24 = vsub.f32 %v222_v20, %v228_v22  ;;  %265 = vst.msk [vmem:[#allocation2] sm:$0xff] %vm44_vm1, %v228_v22  ;;  %242 = vperm.xlu1 %331, %v228_v22  }
 0x1cc   :  { %v227_v25 = vpop.xlane.xlu0 %226 }
 0x1cd   :  { %v229_v26 = vmax.f32 %v223_v23, %v227_v25  ;;  %v234_v36 = vmul.f32 1.442695, %v232_v24 }
 0x1cf   :  { %v233_v27 = vsub.f32 %v223_v23, %v229_v26  ;;  %266 = vst.msk [vmem:[#allocation2 + $0x8] sm:$0xff] %vm44_vm1, %v229_v26  ;;  %247 = vperm.xlu1 %331, %v229_v26  }
 0x1d1   :  { %v236_v37 = vmul.f32 1.442695, %v233_v27 }
 0x1d2   :  { %v267_v52 = vld [vmem:[#allocation2] sm:$0xff] }
 0x1d6   :  { %v268_v56 = vld [vmem:[#allocation2 + $0x8] sm:$0xff] }
 0x24a   :  { %v243_v28 = vpop.permute.xlu1 %242 }
 0x24b   :  { %v250_v29 = vsub.f32 %v220_v15, %v243_v28 }
 0x24d   :  { %v252_v30 = vmul.f32 1.442695, %v250_v29 }
 0x24e   :  { %v248_v31 = vpop.permute.xlu1 %247 }
 0x24f   :  { %342 = vpow2.f32 %v252_v30  ;;  %v251_v32 = vsub.f32 %v221_v18, %v248_v31 }
 0x251   :  { %v254_v33 = vmul.f32 1.442695, %v251_v32 }
 0x253   :  { %344 = vpow2.f32 %v254_v33 }
 0x254   :  { %346 = vpow2.f32 %v234_v36 }
 0x255   :  { %348 = vpow2.f32 %v236_v37 }
 0x259   :  { %v343_v34 = vpop.eup %342 }
 0x25a   :  { %256 = vadd.xlane.f32.xlu0 %v343_v34 }
 0x25d   :  { %v345_v35 = vpop.eup %344 }
 0x25e   :  { %258 = vadd.xlane.f32.xlu1 %v345_v35  ;;  %v347_v38 = vpop.eup %346 }
 0x25f   :  { %v238_v40 = vmul.f32 %v347_v38, %v230_v39  ;;  %v349_v41 = vpop.eup %348 }
 0x260   :  { %v239_v45 = vmul.f32 %v349_v41, %v231_v43 }
 0x2e7   :  { %v257_v42 = vpop.xlane.xlu0 %256 }
 0x2e8   :  { %v260_v44 = vadd.f32 %v257_v42, %v238_v40 }
 0x2ea   :  { %263 = vst.msk [vmem:[#allocation3] sm:$0xff] %vm44_vm1, %v260_v44 }
 0x2eb   :  { %v259_v46 = vpop.xlane.xlu1 %258 }
 0x2ec   :  { %v261_v47 = vadd.f32 %v259_v46, %v239_v45 }
 0x2ee   :  { %264 = vst.msk [vmem:[#allocation3 + $0x8] sm:$0xff] %vm44_vm1, %v261_v47 }
 0x2f1   :  { %v269_v48 = vld [vmem:[#allocation3] sm:$0xff] }
 0x2f2   :  { %350 = vlog2.f32 %v269_v48 }
 0x2f5   :  { %v270_v49 = vld [vmem:[#allocation3 + $0x8] sm:$0xff] }
 0x2f6   :  { %352 = vlog2.f32 %v270_v49 }
 0x2fc   :  { %v351_v50 = vpop.eup %350 }
 0x2fd   :  { %v272_v51 = vmul.f32 0.6931472, %v351_v50 }
 0x2ff   :  { %v275_v53 = vadd.f32 %v272_v51, %v267_v52 }
 0x300   :  { %v353_v54 = vpop.eup %352 }
 0x301   :  { %277 = vst.msk [vmem:[%s467_s2] sm:$0xff] %vm44_vm1, %v275_v53  ;;  %v274_v55 = vmul.f32 0.6931472, %v353_v54 }
 0x303   :  { %v276_v57 = vadd.f32 %v274_v55, %v268_v56 }
 0x305   :  { %278 = vst.msk [vmem:[%s467_s2 + $0x8] sm:$0xff] %vm44_vm1, %v276_v57 }
 0x306   :  { %283 = vsyncpa [#allocation5], 1 }
 0x307   :  { %284 = vsyncpa [#allocation7], 1 }

</bundles_post_ra>
